<compile_context>
chip_gen: v5e
topology: v5e:2x2
jax: 0.10.0
libtpu: 0.0.40
codegen_flags: <defaults>
</compile_context>

<pallas_src>
import jax
import jax.numpy as jnp
from jax import lax
from jax.experimental import pallas as pl
from jax.experimental.pallas import tpu as pltpu

BN_EPS = 1e-5


# ----------------------------- fused kernel ---------------------------------
def _make_mixblock_kernel(N, C, H, W):
    C2 = 2 * C
    HW = H * W
    # Aligned zero halo on the flattened lane axis; must cover |off| <= W + 1.
    PAD = ((W + 1 + 127) // 128) * 128

    def kernel(x1_ref, x2_ref, w1a_ref, w1b_ref, b1_ref, gamma_ref, beta_ref,
               w2_ref, b2_ref, o_ref):
        w1a = w1a_ref[...]                        # (C2, C)
        w1b = w1b_ref[...]                        # (C2, C)
        b1 = b1_ref[...]                          # (C2, 1)

        # ---- 1x1 conv with folded concat: h_n = W1a @ x1_n + W1b @ x2_n + b1
        hs = []
        for n in range(N):                        # N is small & static
            hn = (jnp.dot(w1a, x1_ref[n], preferred_element_type=jnp.float32)
                  + jnp.dot(w1b, x2_ref[n], preferred_element_type=jnp.float32)
                  + b1)                           # (C2, HW), lane-dense
            hs.append(hn)

        # ---- BatchNorm2d (training-mode batch stats over all N*H*W) --------
        cnt = float(N * HW)
        mean = sum(jnp.sum(h, axis=1, keepdims=True) for h in hs) / cnt   # (C2,1)
        var = sum(jnp.sum(jnp.square(h - mean), axis=1, keepdims=True)
                  for h in hs) / cnt                                      # (C2,1)
        scale = gamma_ref[...] * lax.rsqrt(var + BN_EPS)                  # (C2,1)
        shift = beta_ref[...] - mean * scale                              # (C2,1)

        # ---- 3x3 conv (padding=1) + sigmoid, vectorized along lanes ---------
        # Row halo is handled by the zero extension of the flattened array;
        # only the left/right column halo needs a mask (depends on dx only).
        lane = lax.broadcasted_iota(jnp.int32, (1, HW), 1)
        colp = lane % W
        col_ok = (colp >= 1, None, colp <= W - 2)          # masks for dx = 0,1,2
        zpad = jnp.zeros((C2, PAD), jnp.float32)
        w2m = w2_ref[...]                                  # (2, 9*C2)
        b2 = b2_ref[...]                                   # (2, 1)

        for n in range(N):
            h = jnp.maximum(hs[n] * scale + shift, 0.0)    # BN + ReLU, (C2, HW)
            g = jnp.concatenate([zpad, h, zpad], axis=1)   # aligned lane concat
            taps = []
            for dy in range(3):
                for dx in range(3):
                    start = PAD + (dy - 1) * W + (dx - 1)
                    win = g[:, start:start + HW]           # shifted window
                    if col_ok[dx] is not None:
                        win = jnp.where(col_ok[dx], win, 0.0)
                    taps.append(win)
            patches = jnp.concatenate(taps, axis=0)        # (9*C2, HW)
            y = jnp.dot(w2m, patches,
                        preferred_element_type=jnp.float32) + b2   # (2, HW)
            o_ref[n] = jax.nn.sigmoid(y)

    return kernel


# ----------------------------- wrapper ---------------------------------------
def mixblock_forward(x1, x2, params):
    w1, b1, gamma, beta, w2, b2 = params
    N, C, H, W = x1.shape
    C2 = 2 * C
    HW = H * W

    kernel = _make_mixblock_kernel(N, C, H, W)

    # Free reshapes / tiny parameter reshuffles only.
    x1f = x1.reshape(N, C, HW)
    x2f = x2.reshape(N, C, HW)
    w1a = w1[:, :C]                               # conv1 weights on x1 channels
    w1b = w1[:, C:]                               # conv1 weights on x2 channels
    w2m = jnp.transpose(w2.reshape(9 * C2, 2))    # (2, 9*C2), tap-major K

    vmem = pl.BlockSpec(memory_space=pltpu.MemorySpace.VMEM)
    out = pl.pallas_call(
        kernel,
        out_shape=jax.ShapeDtypeStruct((N, 2, HW), jnp.float32),
        in_specs=[vmem] * 9,
        out_specs=vmem,
    )(x1f, x2f, w1a, w1b, b1[:, None], gamma[:, None], beta[:, None],
      w2m, b2[:, None])

    y = out.reshape(N, 2, H, W)
    return y[:, 0:1], y[:, 1:2]                   # torch.split(x, 1, dim=1)


# ----------------------------- pure-JAX reference ----------------------------
def mixblock_reference(x1, x2, params):
    w1, b1, gamma, beta, w2, b2 = params
    x = jnp.concatenate([x1, x2], axis=1)                         # NCHW
    h = lax.conv_general_dilated(
        x, w1[:, :, None, None], (1, 1), "VALID",
        dimension_numbers=("NCHW", "OIHW", "NCHW")) + b1[None, :, None, None]
    mean = jnp.mean(h, axis=(0, 2, 3), keepdims=True)
    var = jnp.mean((h - mean) ** 2, axis=(0, 2, 3), keepdims=True)
    h = (h - mean) * lax.rsqrt(var + BN_EPS)
    h = h * gamma[None, :, None, None] + beta[None, :, None, None]
    h = jnp.maximum(h, 0.0)
    w2_oihw = jnp.transpose(w2, (3, 2, 0, 1))                     # (2, C2, 3, 3)
    y = lax.conv_general_dilated(
        h, w2_oihw, (1, 1), ((1, 1), (1, 1)),
        dimension_numbers=("NCHW", "OIHW", "NCHW")) + b2[None, :, None, None]
    y = jax.nn.sigmoid(y)
    return y[:, 0:1], y[:, 1:2]


if __name__ == "__main__":
    key = jax.random.PRNGKey(0)
    ks = jax.random.split(key, 8)

    N, C, H, W = 2, 4, 16, 16          # MixBlock(c_in=4) -> internal channels 8
    C2 = 2 * C

    x1 = jax.random.normal(ks[0], (N, C, H, W), jnp.float32)
    x2 = jax.random.normal(ks[1], (N, C, H, W), jnp.float32)

    # Deterministic synthetic parameters (shapes follow MixBlock.__init__).
    w1 = 0.3 * jax.random.normal(ks[2], (C2, C2), jnp.float32)        # conv1 (out, in)
    b1 = 0.1 * jax.random.normal(ks[3], (C2,), jnp.float32)
    gamma = 1.0 + 0.1 * jax.random.normal(ks[4], (C2,), jnp.float32)  # BN weight
    beta = 0.1 * jax.random.normal(ks[5], (C2,), jnp.float32)         # BN bias
    w2 = 0.2 * jax.random.normal(ks[6], (3, 3, C2, 2), jnp.float32)   # (ky,kx,Cin,Cout)
    b2 = 0.1 * jax.random.normal(ks[7], (2,), jnp.float32)
    params = (w1, b1, gamma, beta, w2, b2)

    y1, y2 = jax.jit(mixblock_forward)(x1, x2, params)
    jax.block_until_ready((y1, y2))

    r1, r2 = mixblock_reference(x1, x2, params)
    assert y1.shape == (N, 1, H, W) and y2.shape == (N, 1, H, W)
    assert jnp.allclose(y1, r1, atol=1e-3, rtol=1e-3), float(jnp.max(jnp.abs(y1 - r1)))
    assert jnp.allclose(y2, r2, atol=1e-3, rtol=1e-3), float(jnp.max(jnp.abs(y2 - r2)))

    print("KERNEL_OK")
</pallas_src>

<mosaic_0001>
module attributes {stable_mosaic.version = 11 : i64} {
  func.func @kernel(%arg0: memref<2x4x256xf32, #tpu.memory_space<vmem>>, %arg1: memref<2x4x256xf32, #tpu.memory_space<vmem>>, %arg2: memref<8x4xf32, #tpu.memory_space<vmem>>, %arg3: memref<8x4xf32, #tpu.memory_space<vmem>>, %arg4: memref<8x1xf32, #tpu.memory_space<vmem>>, %arg5: memref<8x1xf32, #tpu.memory_space<vmem>>, %arg6: memref<8x1xf32, #tpu.memory_space<vmem>>, %arg7: memref<2x72xf32, #tpu.memory_space<vmem>>, %arg8: memref<2x1xf32, #tpu.memory_space<vmem>>, %arg9: memref<2x2x256xf32, #tpu.memory_space<vmem>>) attributes {dimension_semantics = [], scalar_prefetch = 0 : i64, scratch_operands = 0 : i64, tpu.core_type = #tpu.core_type<tc>} {
    %c0 = arith.constant 0 : index
    %c0_0 = arith.constant 0 : index
    %0 = vector.load %arg2[%c0, %c0_0] : memref<8x4xf32, #tpu.memory_space<vmem>>, vector<8x4xf32>
    %c0_1 = arith.constant 0 : index
    %c0_2 = arith.constant 0 : index
    %1 = vector.load %arg3[%c0_1, %c0_2] : memref<8x4xf32, #tpu.memory_space<vmem>>, vector<8x4xf32>
    %c0_3 = arith.constant 0 : index
    %c0_4 = arith.constant 0 : index
    %2 = vector.load %arg4[%c0_3, %c0_4] : memref<8x1xf32, #tpu.memory_space<vmem>>, vector<8x1xf32>
    %c0_5 = arith.constant 0 : index
    %c0_6 = arith.constant 0 : index
    %c0_7 = arith.constant 0 : index
    %3 = vector.load %arg0[%c0_5, %c0_6, %c0_7] : memref<2x4x256xf32, #tpu.memory_space<vmem>>, vector<1x4x256xf32>
    %4 = vector.shape_cast %3 : vector<1x4x256xf32> to vector<4x256xf32>
    %cst = arith.constant dense<0.000000e+00> : vector<8x256xf32>
    %5 = tpu.matmul %0, %4, %cst {dimension_numbers = #tpu.dot_dimension_numbers<[1], [0], [0], [1], [0, 0, 1, 1], [], []>} : vector<8x4xf32>, vector<4x256xf32>, vector<8x256xf32> -> vector<8x256xf32>
    %c0_8 = arith.constant 0 : index
    %c0_9 = arith.constant 0 : index
    %c0_10 = arith.constant 0 : index
    %6 = vector.load %arg1[%c0_8, %c0_9, %c0_10] : memref<2x4x256xf32, #tpu.memory_space<vmem>>, vector<1x4x256xf32>
    %7 = vector.shape_cast %6 : vector<1x4x256xf32> to vector<4x256xf32>
    %cst_11 = arith.constant dense<0.000000e+00> : vector<8x256xf32>
    %8 = tpu.matmul %1, %7, %cst_11 {dimension_numbers = #tpu.dot_dimension_numbers<[1], [0], [0], [1], [0, 0, 1, 1], [], []>} : vector<8x4xf32>, vector<4x256xf32>, vector<8x256xf32> -> vector<8x256xf32>
    %9 = arith.addf %5, %8 : vector<8x256xf32>
    %10 = vector.broadcast %2 : vector<8x1xf32> to vector<8x256xf32>
    %11 = arith.addf %9, %10 : vector<8x256xf32>
    %c1 = arith.constant 1 : index
    %c0_12 = arith.constant 0 : index
    %c0_13 = arith.constant 0 : index
    %12 = vector.load %arg0[%c1, %c0_12, %c0_13] : memref<2x4x256xf32, #tpu.memory_space<vmem>>, vector<1x4x256xf32>
    %13 = vector.shape_cast %12 : vector<1x4x256xf32> to vector<4x256xf32>
    %cst_14 = arith.constant dense<0.000000e+00> : vector<8x256xf32>
    %14 = tpu.matmul %0, %13, %cst_14 {dimension_numbers = #tpu.dot_dimension_numbers<[1], [0], [0], [1], [0, 0, 1, 1], [], []>} : vector<8x4xf32>, vector<4x256xf32>, vector<8x256xf32> -> vector<8x256xf32>
    %c1_15 = arith.constant 1 : index
    %c0_16 = arith.constant 0 : index
    %c0_17 = arith.constant 0 : index
    %15 = vector.load %arg1[%c1_15, %c0_16, %c0_17] : memref<2x4x256xf32, #tpu.memory_space<vmem>>, vector<1x4x256xf32>
    %16 = vector.shape_cast %15 : vector<1x4x256xf32> to vector<4x256xf32>
    %cst_18 = arith.constant dense<0.000000e+00> : vector<8x256xf32>
    %17 = tpu.matmul %1, %16, %cst_18 {dimension_numbers = #tpu.dot_dimension_numbers<[1], [0], [0], [1], [0, 0, 1, 1], [], []>} : vector<8x4xf32>, vector<4x256xf32>, vector<8x256xf32> -> vector<8x256xf32>
    %18 = arith.addf %14, %17 : vector<8x256xf32>
    %19 = vector.broadcast %2 : vector<8x1xf32> to vector<8x256xf32>
    %20 = arith.addf %18, %19 : vector<8x256xf32>
    %cst_19 = arith.constant dense<0.000000e+00> : vector<8xf32>
    %21 = vector.multi_reduction <add>, %11, %cst_19 [1] : vector<8x256xf32> to vector<8xf32>
    %22 = vector.shape_cast %21 : vector<8xf32> to vector<8x1xf32>
    %cst_20 = arith.constant 0.000000e+00 : f32
    %23 = vector.broadcast %cst_20 : f32 to vector<8x1xf32>
    %24 = arith.addf %23, %22 : vector<8x1xf32>
    %cst_21 = arith.constant dense<0.000000e+00> : vector<8xf32>
    %25 = vector.multi_reduction <add>, %20, %cst_21 [1] : vector<8x256xf32> to vector<8xf32>
    %26 = vector.shape_cast %25 : vector<8xf32> to vector<8x1xf32>
    %27 = arith.addf %24, %26 : vector<8x1xf32>
    %cst_22 = arith.constant 5.120000e+02 : f32
    %28 = vector.broadcast %cst_22 : f32 to vector<8x1xf32>
    %29 = arith.divf %27, %28 : vector<8x1xf32>
    %30 = vector.broadcast %29 : vector<8x1xf32> to vector<8x256xf32>
    %31 = arith.subf %11, %30 : vector<8x256xf32>
    %32 = arith.mulf %31, %31 : vector<8x256xf32>
    %cst_23 = arith.constant dense<0.000000e+00> : vector<8xf32>
    %33 = vector.multi_reduction <add>, %32, %cst_23 [1] : vector<8x256xf32> to vector<8xf32>
    %34 = vector.shape_cast %33 : vector<8xf32> to vector<8x1xf32>
    %cst_24 = arith.constant 0.000000e+00 : f32
    %35 = vector.broadcast %cst_24 : f32 to vector<8x1xf32>
    %36 = arith.addf %35, %34 : vector<8x1xf32>
    %37 = vector.broadcast %29 : vector<8x1xf32> to vector<8x256xf32>
    %38 = arith.subf %20, %37 : vector<8x256xf32>
    %39 = arith.mulf %38, %38 : vector<8x256xf32>
    %cst_25 = arith.constant dense<0.000000e+00> : vector<8xf32>
    %40 = vector.multi_reduction <add>, %39, %cst_25 [1] : vector<8x256xf32> to vector<8xf32>
    %41 = vector.shape_cast %40 : vector<8xf32> to vector<8x1xf32>
    %42 = arith.addf %36, %41 : vector<8x1xf32>
    %cst_26 = arith.constant 5.120000e+02 : f32
    %43 = vector.broadcast %cst_26 : f32 to vector<8x1xf32>
    %44 = arith.divf %42, %43 : vector<8x1xf32>
    %c0_27 = arith.constant 0 : index
    %c0_28 = arith.constant 0 : index
    %45 = vector.load %arg5[%c0_27, %c0_28] : memref<8x1xf32, #tpu.memory_space<vmem>>, vector<8x1xf32>
    %cst_29 = arith.constant 9.99999974E-6 : f32
    %46 = vector.broadcast %cst_29 : f32 to vector<8x1xf32>
    %47 = arith.addf %44, %46 : vector<8x1xf32>
    %48 = math.rsqrt %47 : vector<8x1xf32>
    %49 = arith.mulf %45, %48 : vector<8x1xf32>
    %c0_30 = arith.constant 0 : index
    %c0_31 = arith.constant 0 : index
    %50 = vector.load %arg6[%c0_30, %c0_31] : memref<8x1xf32, #tpu.memory_space<vmem>>, vector<8x1xf32>
    %51 = arith.mulf %29, %49 : vector<8x1xf32>
    %52 = arith.subf %50, %51 : vector<8x1xf32>
    %53 = tpu.iota {dimensions = array<i32: 1>} : vector<1x256xi32>
    %c16_i32 = arith.constant 16 : i32
    %c0_i32 = arith.constant 0 : i32
    %54 = arith.cmpi eq, %c16_i32, %c0_i32 : i32
    %c1_i32 = arith.constant 1 : i32
    %55 = arith.select %54, %c1_i32, %c16_i32 : i32
    %56 = vector.broadcast %55 : i32 to vector<1x256xi32>
    %57 = arith.remsi %53, %56 : vector<1x256xi32>
    %c0_i32_32 = arith.constant 0 : i32
    %58 = vector.broadcast %c0_i32_32 : i32 to vector<1x256xi32>
    %59 = arith.cmpi ne, %57, %58 : vector<1x256xi32>
    %c0_i32_33 = arith.constant 0 : i32
    %60 = vector.broadcast %c0_i32_33 : i32 to vector<1x256xi32>
    %61 = arith.cmpi slt, %57, %60 : vector<1x256xi32>
    %c0_i32_34 = arith.constant 0 : i32
    %62 = arith.cmpi slt, %55, %c0_i32_34 : i32
    %63 = vector.broadcast %62 : i1 to vector<1x256xi1>
    %64 = vector.broadcast %63 : vector<1x256xi1> to vector<1x256xi1>
    %65 = arith.xori %61, %64 : vector<1x256xi1>
    %66 = arith.andi %65, %59 : vector<1x256xi1>
    %67 = vector.broadcast %55 : i32 to vector<1x256xi32>
    %68 = arith.addi %57, %67 : vector<1x256xi32>
    %69 = arith.select %66, %68, %57 : vector<1x256xi1>, vector<1x256xi32>
    %c1_i32_35 = arith.constant 1 : i32
    %70 = vector.broadcast %c1_i32_35 : i32 to vector<1x256xi32>
    %71 = arith.cmpi sge, %69, %70 : vector<1x256xi32>
    %c14_i32 = arith.constant 14 : i32
    %72 = vector.broadcast %c14_i32 : i32 to vector<1x256xi32>
    %73 = arith.cmpi sle, %69, %72 : vector<1x256xi32>
    %cst_36 = arith.constant 0.000000e+00 : f32
    %74 = vector.broadcast %cst_36 : f32 to vector<8x128xf32>
    %c0_37 = arith.constant 0 : index
    %c0_38 = arith.constant 0 : index
    %75 = vector.load %arg7[%c0_37, %c0_38] : memref<2x72xf32, #tpu.memory_space<vmem>>, vector<2x72xf32>
    %c0_39 = arith.constant 0 : index
    %c0_40 = arith.constant 0 : index
    %76 = vector.load %arg8[%c0_39, %c0_40] : memref<2x1xf32, #tpu.memory_space<vmem>>, vector<2x1xf32>
    %77 = vector.broadcast %49 : vector<8x1xf32> to vector<8x256xf32>
    %78 = arith.mulf %11, %77 : vector<8x256xf32>
    %79 = vector.broadcast %52 : vector<8x1xf32> to vector<8x256xf32>
    %80 = arith.addf %78, %79 : vector<8x256xf32>
    %cst_41 = arith.constant 0.000000e+00 : f32
    %81 = vector.broadcast %cst_41 : f32 to vector<8x256xf32>
    %82 = arith.maximumf %80, %81 : vector<8x256xf32>
    %83 = tpu.concatenate %74, %82, %74 in 1 : vector<8x128xf32>, vector<8x256xf32>, vector<8x128xf32> -> vector<8x512xf32>
    %84 = vector.extract_strided_slice %83 {offsets = [0, 111], sizes = [8, 256], strides = [1, 1]} : vector<8x512xf32> to vector<8x256xf32>
    %cst_42 = arith.constant 0.000000e+00 : f32
    %85 = vector.shape_cast %71 : vector<1x256xi1> to vector<1x256xi1>
    %86 = vector.broadcast %85 : vector<1x256xi1> to vector<8x256xi1>
    %87 = vector.broadcast %cst_42 : f32 to vector<8x256xf32>
    %88 = arith.select %86, %84, %87 : vector<8x256xi1>, vector<8x256xf32>
    %89 = vector.extract_strided_slice %83 {offsets = [0, 112], sizes = [8, 256], strides = [1, 1]} : vector<8x512xf32> to vector<8x256xf32>
    %90 = vector.extract_strided_slice %83 {offsets = [0, 113], sizes = [8, 256], strides = [1, 1]} : vector<8x512xf32> to vector<8x256xf32>
    %cst_43 = arith.constant 0.000000e+00 : f32
    %91 = vector.shape_cast %73 : vector<1x256xi1> to vector<1x256xi1>
    %92 = vector.broadcast %91 : vector<1x256xi1> to vector<8x256xi1>
    %93 = vector.broadcast %cst_43 : f32 to vector<8x256xf32>
    %94 = arith.select %92, %90, %93 : vector<8x256xi1>, vector<8x256xf32>
    %95 = vector.extract_strided_slice %83 {offsets = [0, 127], sizes = [8, 256], strides = [1, 1]} : vector<8x512xf32> to vector<8x256xf32>
    %cst_44 = arith.constant 0.000000e+00 : f32
    %96 = vector.shape_cast %71 : vector<1x256xi1> to vector<1x256xi1>
    %97 = vector.broadcast %96 : vector<1x256xi1> to vector<8x256xi1>
    %98 = vector.broadcast %cst_44 : f32 to vector<8x256xf32>
    %99 = arith.select %97, %95, %98 : vector<8x256xi1>, vector<8x256xf32>
    %100 = vector.extract_strided_slice %83 {offsets = [0, 128], sizes = [8, 256], strides = [1, 1]} : vector<8x512xf32> to vector<8x256xf32>
    %101 = vector.extract_strided_slice %83 {offsets = [0, 129], sizes = [8, 256], strides = [1, 1]} : vector<8x512xf32> to vector<8x256xf32>
    %cst_45 = arith.constant 0.000000e+00 : f32
    %102 = vector.shape_cast %73 : vector<1x256xi1> to vector<1x256xi1>
    %103 = vector.broadcast %102 : vector<1x256xi1> to vector<8x256xi1>
    %104 = vector.broadcast %cst_45 : f32 to vector<8x256xf32>
    %105 = arith.select %103, %101, %104 : vector<8x256xi1>, vector<8x256xf32>
    %106 = vector.extract_strided_slice %83 {offsets = [0, 143], sizes = [8, 256], strides = [1, 1]} : vector<8x512xf32> to vector<8x256xf32>
    %cst_46 = arith.constant 0.000000e+00 : f32
    %107 = vector.shape_cast %71 : vector<1x256xi1> to vector<1x256xi1>
    %108 = vector.broadcast %107 : vector<1x256xi1> to vector<8x256xi1>
    %109 = vector.broadcast %cst_46 : f32 to vector<8x256xf32>
    %110 = arith.select %108, %106, %109 : vector<8x256xi1>, vector<8x256xf32>
    %111 = vector.extract_strided_slice %83 {offsets = [0, 144], sizes = [8, 256], strides = [1, 1]} : vector<8x512xf32> to vector<8x256xf32>
    %112 = vector.extract_strided_slice %83 {offsets = [0, 145], sizes = [8, 256], strides = [1, 1]} : vector<8x512xf32> to vector<8x256xf32>
    %cst_47 = arith.constant 0.000000e+00 : f32
    %113 = vector.shape_cast %73 : vector<1x256xi1> to vector<1x256xi1>
    %114 = vector.broadcast %113 : vector<1x256xi1> to vector<8x256xi1>
    %115 = vector.broadcast %cst_47 : f32 to vector<8x256xf32>
    %116 = arith.select %114, %112, %115 : vector<8x256xi1>, vector<8x256xf32>
    %117 = tpu.concatenate %88, %89, %94, %99, %100, %105, %110, %111, %116 in 0 : vector<8x256xf32>, vector<8x256xf32>, vector<8x256xf32>, vector<8x256xf32>, vector<8x256xf32>, vector<8x256xf32>, vector<8x256xf32>, vector<8x256xf32>, vector<8x256xf32> -> vector<72x256xf32>
    %cst_48 = arith.constant dense<0.000000e+00> : vector<2x256xf32>
    %118 = tpu.matmul %75, %117, %cst_48 {dimension_numbers = #tpu.dot_dimension_numbers<[1], [0], [0], [1], [0, 0, 1, 1], [], []>} : vector<2x72xf32>, vector<72x256xf32>, vector<2x256xf32> -> vector<2x256xf32>
    %119 = vector.broadcast %76 : vector<2x1xf32> to vector<2x256xf32>
    %120 = arith.addf %118, %119 : vector<2x256xf32>
    %121 = arith.negf %120 : vector<2x256xf32>
    %122 = math.exp %121 : vector<2x256xf32>
    %cst_49 = arith.constant 1.000000e+00 : f32
    %123 = vector.broadcast %cst_49 : f32 to vector<2x256xf32>
    %124 = arith.addf %123, %122 : vector<2x256xf32>
    %125 = arith.divf %123, %124 : vector<2x256xf32>
    %c0_50 = arith.constant 0 : index
    %c0_51 = arith.constant 0 : index
    %c0_52 = arith.constant 0 : index
    %126 = vector.load %arg9[%c0_50, %c0_51, %c0_52] : memref<2x2x256xf32, #tpu.memory_space<vmem>>, vector<1x2x256xf32>
    %127 = vector.shape_cast %126 : vector<1x2x256xf32> to vector<2x256xf32>
    %128 = vector.shape_cast %125 : vector<2x256xf32> to vector<1x2x256xf32>
    tpu.vector_store %arg9[%c0_50, %c0_51, %c0_52], %128 {strides = array<i32>} : memref<2x2x256xf32, #tpu.memory_space<vmem>>, vector<1x2x256xf32>,
    %129 = vector.broadcast %49 : vector<8x1xf32> to vector<8x256xf32>
    %130 = arith.mulf %20, %129 : vector<8x256xf32>
    %131 = vector.broadcast %52 : vector<8x1xf32> to vector<8x256xf32>
    %132 = arith.addf %130, %131 : vector<8x256xf32>
    %cst_53 = arith.constant 0.000000e+00 : f32
    %133 = vector.broadcast %cst_53 : f32 to vector<8x256xf32>
    %134 = arith.maximumf %132, %133 : vector<8x256xf32>
    %135 = tpu.concatenate %74, %134, %74 in 1 : vector<8x128xf32>, vector<8x256xf32>, vector<8x128xf32> -> vector<8x512xf32>
    %136 = vector.extract_strided_slice %135 {offsets = [0, 111], sizes = [8, 256], strides = [1, 1]} : vector<8x512xf32> to vector<8x256xf32>
    %cst_54 = arith.constant 0.000000e+00 : f32
    %137 = vector.shape_cast %71 : vector<1x256xi1> to vector<1x256xi1>
    %138 = vector.broadcast %137 : vector<1x256xi1> to vector<8x256xi1>
    %139 = vector.broadcast %cst_54 : f32 to vector<8x256xf32>
    %140 = arith.select %138, %136, %139 : vector<8x256xi1>, vector<8x256xf32>
    %141 = vector.extract_strided_slice %135 {offsets = [0, 112], sizes = [8, 256], strides = [1, 1]} : vector<8x512xf32> to vector<8x256xf32>
    %142 = vector.extract_strided_slice %135 {offsets = [0, 113], sizes = [8, 256], strides = [1, 1]} : vector<8x512xf32> to vector<8x256xf32>
    %cst_55 = arith.constant 0.000000e+00 : f32
    %143 = vector.shape_cast %73 : vector<1x256xi1> to vector<1x256xi1>
    %144 = vector.broadcast %143 : vector<1x256xi1> to vector<8x256xi1>
    %145 = vector.broadcast %cst_55 : f32 to vector<8x256xf32>
    %146 = arith.select %144, %142, %145 : vector<8x256xi1>, vector<8x256xf32>
    %147 = vector.extract_strided_slice %135 {offsets = [0, 127], sizes = [8, 256], strides = [1, 1]} : vector<8x512xf32> to vector<8x256xf32>
    %cst_56 = arith.constant 0.000000e+00 : f32
    %148 = vector.shape_cast %71 : vector<1x256xi1> to vector<1x256xi1>
    %149 = vector.broadcast %148 : vector<1x256xi1> to vector<8x256xi1>
    %150 = vector.broadcast %cst_56 : f32 to vector<8x256xf32>
    %151 = arith.select %149, %147, %150 : vector<8x256xi1>, vector<8x256xf32>
    %152 = vector.extract_strided_slice %135 {offsets = [0, 128], sizes = [8, 256], strides = [1, 1]} : vector<8x512xf32> to vector<8x256xf32>
    %153 = vector.extract_strided_slice %135 {offsets = [0, 129], sizes = [8, 256], strides = [1, 1]} : vector<8x512xf32> to vector<8x256xf32>
    %cst_57 = arith.constant 0.000000e+00 : f32
    %154 = vector.shape_cast %73 : vector<1x256xi1> to vector<1x256xi1>
    %155 = vector.broadcast %154 : vector<1x256xi1> to vector<8x256xi1>
    %156 = vector.broadcast %cst_57 : f32 to vector<8x256xf32>
    %157 = arith.select %155, %153, %156 : vector<8x256xi1>, vector<8x256xf32>
    %158 = vector.extract_strided_slice %135 {offsets = [0, 143], sizes = [8, 256], strides = [1, 1]} : vector<8x512xf32> to vector<8x256xf32>
    %cst_58 = arith.constant 0.000000e+00 : f32
    %159 = vector.shape_cast %71 : vector<1x256xi1> to vector<1x256xi1>
    %160 = vector.broadcast %159 : vector<1x256xi1> to vector<8x256xi1>
    %161 = vector.broadcast %cst_58 : f32 to vector<8x256xf32>
    %162 = arith.select %160, %158, %161 : vector<8x256xi1>, vector<8x256xf32>
    %163 = vector.extract_strided_slice %135 {offsets = [0, 144], sizes = [8, 256], strides = [1, 1]} : vector<8x512xf32> to vector<8x256xf32>
    %164 = vector.extract_strided_slice %135 {offsets = [0, 145], sizes = [8, 256], strides = [1, 1]} : vector<8x512xf32> to vector<8x256xf32>
    %cst_59 = arith.constant 0.000000e+00 : f32
    %165 = vector.shape_cast %73 : vector<1x256xi1> to vector<1x256xi1>
    %166 = vector.broadcast %165 : vector<1x256xi1> to vector<8x256xi1>
    %167 = vector.broadcast %cst_59 : f32 to vector<8x256xf32>
    %168 = arith.select %166, %164, %167 : vector<8x256xi1>, vector<8x256xf32>
    %169 = tpu.concatenate %140, %141, %146, %151, %152, %157, %162, %163, %168 in 0 : vector<8x256xf32>, vector<8x256xf32>, vector<8x256xf32>, vector<8x256xf32>, vector<8x256xf32>, vector<8x256xf32>, vector<8x256xf32>, vector<8x256xf32>, vector<8x256xf32> -> vector<72x256xf32>
    %cst_60 = arith.constant dense<0.000000e+00> : vector<2x256xf32>
    %170 = tpu.matmul %75, %169, %cst_60 {dimension_numbers = #tpu.dot_dimension_numbers<[1], [0], [0], [1], [0, 0, 1, 1], [], []>} : vector<2x72xf32>, vector<72x256xf32>, vector<2x256xf32> -> vector<2x256xf32>
    %171 = vector.broadcast %76 : vector<2x1xf32> to vector<2x256xf32>
    %172 = arith.addf %170, %171 : vector<2x256xf32>
    %173 = arith.negf %172 : vector<2x256xf32>
    %174 = math.exp %173 : vector<2x256xf32>
    %cst_61 = arith.constant 1.000000e+00 : f32
    %175 = vector.broadcast %cst_61 : f32 to vector<2x256xf32>
    %176 = arith.addf %175, %174 : vector<2x256xf32>
    %177 = arith.divf %175, %176 : vector<2x256xf32>
    %c1_62 = arith.constant 1 : index
    %c0_63 = arith.constant 0 : index
    %c0_64 = arith.constant 0 : index
    %178 = vector.load %arg9[%c1_62, %c0_63, %c0_64] : memref<2x2x256xf32, #tpu.memory_space<vmem>>, vector<1x2x256xf32>
    %179 = vector.shape_cast %178 : vector<1x2x256xf32> to vector<2x256xf32>
    %180 = vector.shape_cast %177 : vector<2x256xf32> to vector<1x2x256xf32>
    tpu.vector_store %arg9[%c1_62, %c0_63, %c0_64], %180 {strides = array<i32>} : memref<2x2x256xf32, #tpu.memory_space<vmem>>, vector<1x2x256xf32>,
    return
  }
}

</mosaic_0001>

<bundles_post_ra>
// kernel: mixblock_forward.1
= control target key start
LH: loop header
LB: loop body
LE: loop exit
PB: predicated region body
PF: predicated region fallthrough
CT: control target
= control target key end

     0   :  { %v831_v2 = vmov 0   ;;  %vm45_vm0 = vcmask 1043456   ;;  %vm41_vm1 = vcmask 31744   ;;  %v832_v16 = vmov 0.0   ;;  %s837_s21 = smov 127   ;;  %s838_s22 = smov 17   ;;  %s1191_s1 = inlined_call_operand.vmem [shape: f32[2,4,256], index: 1, kind: input, shape index: {}]   ;;  %s1192_s4 = inlined_call_operand.vmem [shape: f32[8,1], index: 4, kind: input, shape index: {}]   ;;  %s1193_s0 = inlined_call_operand.vmem [shape: f32[2,4,256], index: 0, kind: input, shape index: {}]   ;;  %s1194_s3 = inlined_call_operand.vmem [shape: f32[8,4], index: 3, kind: input, shape index: {}]   ;;  %s1195_s2 = inlined_call_operand.vmem [shape: f32[8,4], index: 2, kind: input, shape index: {}]   ;;  %s1196_s5 = inlined_call_operand.vmem [shape: f32[8,1], index: 5, kind: input, shape index: {}]   ;;  %s1197_s6 = inlined_call_operand.vmem [shape: f32[8,1], index: 6, kind: input, shape index: {}]   ;;  %s1198_s8 = inlined_call_operand.vmem [shape: f32[2,1], index: 8, kind: input, shape index: {}]   ;;  %s1199_s7 = inlined_call_operand.vmem [shape: f32[2,72], index: 7, kind: input, shape index: {}]   ;;  %s1200_s9 = inlined_call_operand.vmem [shape: f32[2,2,256], index: 9, kind: output, shape index: {}]  }
   0x1   :  { %v36_v0 = vld [vmem:[%s1191_s1] sm:$0xff]  ;;  %788 = vset.pattern.permute.xlu0 %v831_v2  ;;  %789 = vset.pattern.permute.xlu2 %v831_v2  ;;  %v735_v7 = vld [vmem:[%s1191_s1 + $0x8] sm:$0xff]  ;;  %s834_s1 = smov 1   ;;  %v835_v36 = vmov 512.0   ;;  %s839_s23 = smov 15   ;;  %vm430_vm6 = vcmask 908288  }
   0x2   :  { %38 = vst [vmem:[#allocation1] ss:$2 sm:$0xff] %v36_v0  ;;  %v34_v1 = vld [vmem:[%s1192_s4] sm:$0xff]  ;;  %790 = vset.pattern.permute.xlu1 %v831_v2  ;;  %v734_v11 = vld [vmem:[%s1193_s0 + $0x8] sm:$0xff]  ;;  %811 = vrcp.f32 %v835_v36  ;;  %vm454_vm9 = vcmask 916480   ;;  %vm417_vm10 = vcmask 924672  }
   0x3   :  { %143 = vperm.xlu0 %788, %v34_v1   ;;  %v35_v3 = vld [vmem:[%s1193_s0] sm:$0xff]  ;;  %s833_s0 = smov 111   ;;  %vm404_vm13 = vcmask 1039360   ;;  %vm391_vm14 = vcmask 7168   ;;  %vm378_vm15 = vcmask 121856  }
   0x4   :  { %v33_v4 = vld [vmem:[%s1194_s3] sm:$0xff]  ;;  %428 = vrot.lane.b32.xlu2 %v832_v16, %s833_s0 }
   0x5   :  { %v32_v8 = vld [vmem:[%s1195_s2] sm:$0xff]  ;;  %s836_s2 = smov 113  }
   0x8   :  { %v812_v37 = vpop.eup %811 }
   0x9   :  { %v39_v5 = vld.sshfl [vmem:[#allocation1] sm:$0xff pattern:$0x75316420]  ;;  %v40_v6 = vld.sshfl [vmem:[#allocation1 + $0x8] sm:$0xff pattern:$0x75316420]  ;;  %vm263_vm2 = vweird.f32 %v812_v37 }
   0xa   :  { %91 = vst [vmem:[#allocation1] ss:$2 sm:$0xff] %v35_v3  ;;  %726 = vmatpush.msk.msra.mxu0 %vm45_vm0, %v39_v5  ;;  %728 = vmatpush.msk.msra.mxu1 %vm45_vm0, %v40_v6  ;;  %v259_v38 = vmul.f32 512.0, %v812_v37  ;;  %v283_v5 = vld [vmem:[%s1196_s5] sm:$0xff]  ;;  %s840_s5 = smov 112  }
   0xb   :  { %727 = vmatmul.msk.f32.vlgmr.msra.gmra.mxu0 %vm41_vm1, %v33_v4  ;;  %729 = vmatmul.msk.f32.vlgmr.msra.gmra.mxu1 %vm41_vm1, %v33_v4 }
   0xc   :  { %385 = vrot.lane.b32.xlu2 %v832_v16, %s834_s1  ;;  %v260_v39 = vsub.f32 1.0, %v259_v38 }
   0xe   :  { %v261_v40 = vmul.f32 %v812_v37, %v260_v39 }
  0x10   :  { %v262_v41 = vadd.f32 %v812_v37, %v261_v40 }
  0x11   :  { %v92_v9 = vld.sshfl [vmem:[#allocation1] sm:$0xff pattern:$0x75316420]  ;;  %v93_v10 = vld.sshfl [vmem:[#allocation1 + $0x8] sm:$0xff pattern:$0x75316420] }
  0x12   :  { %730 = vmatpush.msk.msra.mxu2 %vm45_vm0, %v92_v9  ;;  %732 = vmatpush.msk.msra.mxu3 %vm45_vm0, %v93_v10  ;;  %153 = vst [vmem:[#allocation1] ss:$2 sm:$0xff] %v735_v7  ;;  %v264_v43 = vsel %vm263_vm2, %v812_v37, %v262_v41  ;;  %v296_v9 = vld [vmem:[%s1197_s6] sm:$0xff]  ;;  %s841_s6 = smov 16   ;;  %vm464_vm2 = vcmask 588800  }
  0x13   :  { %731 = vmatmul.msk.f32.vlgmr.msra.gmra.mxu2 %vm41_vm1, %v32_v8  ;;  %733 = vmatmul.msk.f32.vlgmr.msra.gmra.mxu3 %vm41_vm1, %v32_v8 }
  0x19   :  { %v154_v12 = vld.sshfl [vmem:[#allocation1] sm:$0xff pattern:$0x75316420]  ;;  %v155_v13 = vld.sshfl [vmem:[#allocation1 + $0x8] sm:$0xff pattern:$0x75316420] }
  0x1a   :  { %201 = vst [vmem:[#allocation1] ss:$2 sm:$0xff] %v734_v11  ;;  %736 = vmatpush.msk.msrb.mxu0 %vm45_vm0, %v154_v12  ;;  %738 = vmatpush.msk.msrb.mxu1 %vm45_vm0, %v155_v13 }
  0x1b   :  { %737 = vmatmul.msk.f32.vlgmr.msrb.gmra.mxu0 %vm41_vm1, %v33_v4  ;;  %739 = vmatmul.msk.f32.vlgmr.msrb.gmra.mxu1 %vm41_vm1, %v33_v4 }
  0x21   :  { %v202_v14 = vld.sshfl [vmem:[#allocation1] sm:$0xff pattern:$0x75316420]  ;;  %v203_v15 = vld.sshfl [vmem:[#allocation1 + $0x8] sm:$0xff pattern:$0x75316420] }
  0x22   :  { %740 = vmatpush.msk.msrb.mxu2 %vm45_vm0, %v202_v14  ;;  %742 = vmatpush.msk.msrb.mxu3 %vm45_vm0, %v203_v15  ;;  %vm443_vm0 = vcmask 130048  }
  0x23   :  { %741 = vmatmul.msk.f32.vlgmr.msrb.gmra.mxu2 %vm41_vm1, %v32_v8  ;;  %743 = vmatmul.msk.f32.vlgmr.msrb.gmra.mxu3 %vm41_vm1, %v32_v8  ;;  %vm361_vm1 = vcmask 138240  }
  0x5e   :  { %v955_v57 = vpop.permute.xlu2 %428 }
  0x66   :  { %v959_v58 = vpop.permute.xlu2 %385 }
  0x75   :  { %v144_v19 = vpop.permute.xlu0 %143 }
  0x88   :  { %v67_v17 = vpop.f32.mrf.mxu0  ;;  %v87_v18 = vpop.f32.mrf.mxu1 }
  0x96   :  { %v118_v20 = vpop.f32.mrf.mxu2  ;;  %v138_v21 = vpop.f32.mrf.mxu3 }
  0x97   :  { %v119_v22 = vadd.f32 %v118_v20, %v67_v17  ;;  %v139_v23 = vadd.f32 %v138_v21, %v87_v18 }
  0x98   :  { %v177_v27 = vpop.f32.mrf.mxu0  ;;  %v197_v28 = vpop.f32.mrf.mxu1 }
  0x99   :  { %v933_v24 = vadd.f32 %v144_v19, %v119_v22  ;;  %v935_v25 = vadd.f32 %v144_v19, %v139_v23 }
  0x9b   :  { %v250_v26 = vadd.f32 %v935_v25, %v933_v24 }
  0x9d   :  { %251 = vadd.xlane.f32.xlu0 %v250_v26 }
  0xa6   :  { %v225_v29 = vpop.f32.mrf.mxu2  ;;  %v245_v30 = vpop.f32.mrf.mxu3 }
  0xa7   :  { %v226_v31 = vadd.f32 %v225_v29, %v177_v27  ;;  %v246_v32 = vadd.f32 %v245_v30, %v197_v28 }
  0xa9   :  { %v939_v33 = vadd.f32 %v226_v31, %v144_v19  ;;  %v941_v34 = vadd.f32 %v246_v32, %v144_v19 }
  0xab   :  { %v254_v35 = vadd.f32 %v941_v34, %v939_v33 }
  0xad   :  { %255 = vadd.xlane.f32.xlu1 %v254_v35  ;;  %v299_v35 = vlaneseq }
  0xaf   :  { %v300_v36 = vand.u32 127, %v299_v35  ;;  %v330_v35 = vld [vmem:[%s1199_s7] sm:$0x3] }
  0xb1   :  { %372 = vrot.lane.b32.xlu0 %v832_v16, %s839_s23  ;;  %v306_v41 = vand.u32 15, %v300_v36 }
  0xb3   :  { %vm1054_vm8 = vcmp.le.s32.totalorder %v306_v41, 14  ;;  %vm1074_vm12 = vcmp.ge.s32.totalorder %v306_v41, 1 }
 0x110   :  { %v252_v42 = vpop.xlane.xlu0 %251 }
 0x120   :  { %v256_v44 = vpop.xlane.xlu1 %255 }
 0x121   :  { %v257_v45 = vadd.f32 %v256_v44, %v252_v42 }
 0x123   :  { %v265_v46 = vmul.f32 %v264_v43, %v257_v45  ;;  %v1061_v45 = vpop.permute.xlu0 %372 }
 0x125   :  { %v274_v47 = vsub.f32 %v939_v33, %v265_v46  ;;  %v275_v48 = vsub.f32 %v941_v34, %v265_v46  ;;  %v266_v49 = vsub.f32 %v933_v24, %v265_v46  ;;  %v267_v50 = vsub.f32 %v935_v25, %v265_v46 }
 0x127   :  { %v276_v51 = vmul.f32 %v274_v47, %v274_v47  ;;  %v277_v52 = vmul.f32 %v275_v48, %v275_v48  ;;  %v268_v53 = vmul.f32 %v266_v49, %v266_v49  ;;  %v269_v54 = vmul.f32 %v267_v50, %v267_v50 }
 0x129   :  { %v278_v55 = vadd.f32 %v277_v52, %v276_v51  ;;  %v270_v56 = vadd.f32 %v269_v54, %v268_v53 }
 0x12b   :  { %279 = vadd.xlane.f32.xlu2 %v278_v55  ;;  %271 = vadd.xlane.f32.xlu1 %v270_v56 }
 0x144   :  { %415 = vrot.lane.b32.xlu1 %v832_v16, %s836_s2 }
 0x14c   :  { %402 = vrot.lane.b32.xlu1 %v832_v16, %s837_s21 }
 0x154   :  { %355 = vrot.lane.b32.xlu1 %v832_v16, %s838_s22 }
 0x19e   :  { %v280_v59 = vpop.xlane.xlu2 %279  ;;  %v272_v60 = vpop.xlane.xlu1 %271 }
 0x19f   :  { %v281_v61 = vadd.f32 %v280_v59, %v272_v60 }
 0x1a1   :  { %v282_v62 = vmul.f32 %v281_v61, %v264_v43 }
 0x1a3   :  { %v284_v63 = vadd.f32 1e-05, %v282_v62 }
 0x1a5   :  { %813 = vrsqrt.f32 %v284_v63  ;;  %vm291_vm4 = vweird.f32 %v284_v63 }
 0x1ab   :  { %v814_v0 = vpop.eup %813 }
 0x1ac   :  { %v286_v1 = vmul.f32 %v814_v0, %v284_v63  ;;  %vm292_vm3 = vweird.f32 %v814_v0 }
 0x1ad   :  { %vm293_vm5 = vmor %vm291_vm4, %vm292_vm3 }
 0x1ae   :  { %v287_v2 = vmul.f32 %v814_v0, %v286_v1 }
 0x1b0   :  { %v288_v3 = vmul.f32 0.5, %v287_v2 }
 0x1b2   :  { %v289_v4 = vsub.f32 1.5, %v288_v3 }
 0x1b4   :  { %v290_v6 = vmul.f32 %v814_v0, %v289_v4 }
 0x1b6   :  { %v294_v7 = vsel %vm293_vm5, %v814_v0, %v290_v6  ;;  %v967_v12 = vpop.permute.xlu1 %415 }
 0x1b7   :  { %v295_v8 = vmul.f32 %v294_v7, %v283_v5 }
 0x1b9   :  { %334 = vperm.xlu2 %789, %v295_v8   ;;  %v297_v10 = vmul.f32 %v295_v8, %v265_v46 }
 0x1bb   :  { %v298_v11 = vsub.f32 %v296_v9, %v297_v10 }
 0x1bd   :  { %341 = vperm.xlu1 %790, %v298_v11  }
 0x1be   :  { %v969_v13 = vpop.permute.xlu1 %402 }
 0x1c6   :  { %v971_v14 = vpop.permute.xlu1 %355 }
 0x213   :  { %v335_v15 = vpop.permute.xlu2 %334 }
 0x214   :  { %v554_v17 = vmul.f32 %v335_v15, %v941_v34  ;;  %v553_v21 = vmul.f32 %v335_v15, %v939_v33  ;;  %v338_v26 = vmul.f32 %v335_v15, %v935_v25  ;;  %v337_v25 = vmul.f32 %v335_v15, %v933_v24  ;;  %v331_v34 = vld [vmem:[%s1198_s8] sm:$0x3] }
 0x22f   :  { %v342_v18 = vpop.permute.xlu1 %341 }
 0x230   :  { %v556_v19 = vadd.f32 %v554_v17, %v342_v18  ;;  %v555_v23 = vadd.f32 %v553_v21, %v342_v18  ;;  %v345_v27 = vadd.f32 %v342_v18, %v338_v26  ;;  %v344_v31 = vadd.f32 %v342_v18, %v337_v25 }
 0x232   :  { %v974_v20 = vmax.f32 %v556_v19, 0.0  ;;  %v984_v28 = vmax.f32 %v555_v23, 0.0  ;;  %v990_v29 = vmax.f32 %v345_v27, 0.0  ;;  %v1007_v32 = vmax.f32 %v344_v31, 0.0 }
 0x234   :  { %603 = vrot.lane.b32.xlu0 %v974_v20, %s836_s2  ;;  %613 = vrot.lane.b32.xlu2 %v974_v20, %s833_s0  ;;  %v791_v22 = vpack.i.bf16 %v974_v20, %v832_v16  ;;  %v796_v30 = vpack.i.bf16 %v990_v29, %v984_v28  ;;  %v801_v24 = vpack.i.bf16 %v974_v20, %v984_v28 }
 0x235   :  { %v806_v33 = vpack.i.bf16 %v1007_v32, %v832_v16  ;;  %v301_v16 = vadd.s32 128, %v300_v36 }
 0x236   :  { %792 = vrot.lane.b32.xlu1 %v791_v22, %s840_s5 }
 0x237   :  { %v313_v37 = vand.u32 15, %v301_v16 }
 0x239   :  { %vm1046_vm7 = vcmp.le.s32.totalorder %v313_v37, 14  ;;  %vm1070_vm11 = vcmp.ge.s32.totalorder %v313_v37, 1 }
 0x23c   :  { %601 = vrot.lane.b32.xlu0 %v984_v28, %s836_s2  ;;  %611 = vrot.lane.b32.xlu2 %v984_v28, %s833_s0 }
 0x23e   :  { %593 = vrot.lane.b32.xlu1 %v974_v20, %s837_s21 }
 0x244   :  { %413 = vrot.lane.b32.xlu0 %v990_v29, %s836_s2  ;;  %797 = vrot.lane.b32.xlu2 %v796_v30, %s840_s5 }
 0x246   :  { %591 = vrot.lane.b32.xlu1 %v984_v28, %s837_s21 }
 0x24c   :  { %583 = vrot.lane.b32.xlu0 %v974_v20, %s834_s1  ;;  %426 = vrot.lane.b32.xlu2 %v990_v29, %s833_s0 }
 0x24e   :  { %581 = vrot.lane.b32.xlu1 %v984_v28, %s834_s1 }
 0x254   :  { %411 = vrot.lane.b32.xlu0 %v1007_v32, %s836_s2  ;;  %424 = vrot.lane.b32.xlu2 %v1007_v32, %s833_s0 }
 0x256   :  { %400 = vrot.lane.b32.xlu1 %v990_v29, %s837_s21 }
 0x25c   :  { %387 = vrot.lane.b32.xlu0 %v1007_v32, %s834_s1  ;;  %448 = vrot.lane.b32.xlu2 %v1007_v32, %s840_s5 }
 0x25e   :  { %573 = vrot.lane.b32.xlu1 %v974_v20, %s839_s23 }
 0x264   :  { %561 = vrot.lane.b32.xlu0 %v984_v28, %s838_s22  ;;  %571 = vrot.lane.b32.xlu2 %v984_v28, %s839_s23 }
 0x266   :  { %802 = vrot.lane.b32.xlu1 %v801_v24, %s841_s6 }
 0x26c   :  { %374 = vrot.lane.b32.xlu0 %v1007_v32, %s839_s23  ;;  %398 = vrot.lane.b32.xlu2 %v1007_v32, %s837_s21 }
 0x26e   :  { %807 = vrot.lane.b32.xlu1 %v806_v33, %s841_s6 }
 0x274   :  { %357 = vrot.lane.b32.xlu0 %v1007_v32, %s838_s22  ;;  %389 = vrot.lane.b32.xlu2 %v990_v29, %s834_s1 }
 0x276   :  { %441 = vrot.lane.b32.xlu1 %v990_v29, %s841_s6 }
 0x27c   :  { %563 = vrot.lane.b32.xlu2 %v974_v20, %s838_s22 }
 0x27e   :  { %461 = vperm.xlu1 %790, %v331_v34  }
 0x284   :  { %376 = vrot.lane.b32.xlu2 %v990_v29, %s839_s23 }
 0x28c   :  { %359 = vrot.lane.b32.xlu2 %v990_v29, %s838_s22 }
 0x28e   :  { %v614_v39 = vpop.permute.xlu2 %613 }
 0x28f   :  { %v616_v40 = vsel %vm430_vm6, %v614_v39, %v955_v57 }
 0x290   :  { %767 = vmatpush.msk.msra.mxu3 %vm1046_vm7, %v616_v40 }
 0x296   :  { %v612_v43 = vpop.permute.xlu2 %611 }
 0x297   :  { %v615_v44 = vsel %vm430_vm6, %v612_v43, %v614_v39 }
 0x298   :  { %760 = vmatpush.msk.msra.mxu2 %vm1054_vm8, %v615_v44 }
 0x29e   :  { %v798_v46 = vpop.permute.xlu2 %797 }
 0x29f   :  { %v800_v51 = vunpack.i.h.bf16 %v798_v46  ;;  %v799_v52 = vunpack.i.l.bf16 %v798_v46 }
 0x2a6   :  { %v427_v47 = vpop.permute.xlu2 %426  ;;  %v604_v48 = vpop.permute.xlu0 %603 }
 0x2a7   :  { %v432_v49 = vsel %vm430_vm6, %v427_v47, %v955_v57  ;;  %v606_v61 = vsel %vm417_vm10, %v604_v48, %v967_v12 }
 0x2a8   :  { %v793_v50 = vpop.permute.xlu1 %792  ;;  %751 = vmatpush.msk.msra.mxu1 %vm1046_vm7, %v432_v49 }
 0x2a9   :  { %v795_v53 = vunpack.i.h.bf16 %v793_v50  ;;  %v794_v54 = vunpack.i.l.bf16 %v793_v50 }
 0x2ab   :  { %v456_v55 = vsel %vm454_vm9, %v800_v51, %v794_v54  ;;  %v633_v56 = vsel %vm454_vm9, %v799_v52, %v795_v53  ;;  %v634_v59 = vsel %vm454_vm9, %v795_v53, %v794_v54 }
 0x2ac   :  { %496 = vmatpush.msra.mxu1 %v456_v55  ;;  %645 = vmatpush.msra.mxu2 %v633_v56 }
 0x2ad   :  { %665 = vmatpush.msra.mxu3 %v634_v59 }
 0x2ae   :  { %v425_v62 = vpop.permute.xlu2 %424  ;;  %v602_v63 = vpop.permute.xlu0 %601 }
 0x2af   :  { %v431_v0 = vsel %vm430_vm6, %v425_v62, %v427_v47  ;;  %768 = vmatpush.msk.msra.mxu3 %vm1070_vm11, %v606_v61  ;;  %v605_v1 = vsel %vm417_vm10, %v602_v63, %v604_v48 }
 0x2b0   :  { %v594_v2 = vpop.permute.xlu1 %593  ;;  %744 = vmatpush.msk.msra.mxu0 %vm1054_vm8, %v431_v0  ;;  %761 = vmatpush.msk.msra.mxu2 %vm1074_vm12, %v605_v1 }
 0x2b1   :  { %v596_v3 = vsel %vm404_vm13, %v594_v2, %v969_v13 }
 0x2b2   :  { %769 = vmatpush.msk.msra.mxu3 %vm1046_vm7, %v596_v3 }
 0x2b4   :  { %668 = vmatpush.msra.mxu3 %v974_v20 }
 0x2b6   :  { %v449_v4 = vpop.permute.xlu2 %448  ;;  %v414_v5 = vpop.permute.xlu0 %413 }
 0x2b7   :  { %v419_v6 = vsel %vm417_vm10, %v414_v5, %v967_v12  ;;  %v455_v7 = vsel %vm454_vm9, %v449_v4, %v800_v51 }
 0x2b8   :  { %v592_v8 = vpop.permute.xlu1 %591  ;;  %476 = vmatpush.msra.mxu0 %v455_v7  ;;  %752 = vmatpush.msk.msra.mxu1 %vm1070_vm11, %v419_v6 }
 0x2b9   :  { %v595_v9 = vsel %vm404_vm13, %v592_v8, %v594_v2 }
 0x2ba   :  { %762 = vmatpush.msk.msra.mxu2 %vm1054_vm8, %v595_v9 }
 0x2bc   :  { %648 = vmatpush.msra.mxu2 %v984_v28 }
 0x2be   :  { %v572_v10 = vpop.permute.xlu2 %571  ;;  %v584_v11 = vpop.permute.xlu0 %583 }
 0x2bf   :  { %v575_v18 = vsel %vm378_vm15, %v1061_v45, %v572_v10 }
 0x2c0   :  { %v582_v15 = vpop.permute.xlu1 %581 }
 0x2c1   :  { %v585_v12 = vsel %vm391_vm14, %v959_v58, %v582_v15  ;;  %v586_v17 = vsel %vm391_vm14, %v582_v15, %v584_v11 }
 0x2c2   :  { %763 = vmatpush.msk.msra.mxu2 %vm1074_vm12, %v585_v12  ;;  %770 = vmatpush.msk.msra.mxu3 %vm1070_vm11, %v586_v17 }
 0x2c4   :  { %764 = vmatpush.msk.msra.mxu2 %vm1054_vm8, %v575_v18 }
 0x2c6   :  { %v399_v19 = vpop.permute.xlu2 %398  ;;  %v412_v20 = vpop.permute.xlu0 %411 }
 0x2c7   :  { %v418_v21 = vsel %vm417_vm10, %v412_v20, %v414_v5 }
 0x2c8   :  { %v401_v22 = vpop.permute.xlu1 %400  ;;  %745 = vmatpush.msk.msra.mxu0 %vm1074_vm12, %v418_v21 }
 0x2c9   :  { %v405_v23 = vsel %vm404_vm13, %v399_v19, %v401_v22  ;;  %v406_v26 = vsel %vm404_vm13, %v401_v22, %v969_v13 }
 0x2ca   :  { %746 = vmatpush.msk.msra.mxu0 %vm1054_vm8, %v405_v23  ;;  %753 = vmatpush.msk.msra.mxu1 %vm1046_vm7, %v406_v26 }
 0x2cc   :  { %479 = vmatpush.msra.mxu0 %v1007_v32  ;;  %499 = vmatpush.msra.mxu1 %v990_v29 }
 0x2ce   :  { %v390_v27 = vpop.permute.xlu2 %389  ;;  %v388_v28 = vpop.permute.xlu0 %387 }
 0x2cf   :  { %v392_v30 = vsel %vm391_vm14, %v959_v58, %v388_v28  ;;  %v393_v25 = vsel %vm391_vm14, %v388_v28, %v390_v27 }
 0x2d0   :  { %v574_v31 = vpop.permute.xlu1 %573  ;;  %747 = vmatpush.msk.msra.mxu0 %vm1074_vm12, %v392_v30  ;;  %754 = vmatpush.msk.msra.mxu1 %vm1070_vm11, %v393_v25 }
 0x2d1   :  { %v576_v13 = vsel %vm378_vm15, %v572_v10, %v574_v31 }
 0x2d2   :  { %771 = vmatpush.msk.msra.mxu3 %vm1046_vm7, %v576_v13 }
 0x2d6   :  { %v564_v29 = vpop.permute.xlu2 %563  ;;  %v562_v32 = vpop.permute.xlu0 %561 }
 0x2d7   :  { %v566_v36 = vsel %vm361_vm1, %v562_v32, %v564_v29 }
 0x2d8   :  { %v803_v24 = vpop.permute.xlu1 %802 }
 0x2d9   :  { %v805_v33 = vunpack.i.h.bf16 %v803_v24  ;;  %v804_v58 = vunpack.i.l.bf16 %v803_v24 }
 0x2db   :  { %v626_v34 = vsel %vm443_vm0, %v804_v58, %v805_v33 }
 0x2dc   :  { %671 = vmatpush.msra.mxu3 %v626_v34 }
 0x2de   :  { %v377_v16 = vpop.permute.xlu2 %376  ;;  %772 = vmatpush.msk.msra.mxu3 %vm1070_vm11, %v566_v36  ;;  %v375_v37 = vpop.permute.xlu0 %374 }
 0x2df   :  { %v379_v39 = vsel %vm378_vm15, %v1061_v45, %v375_v37  ;;  %v380_v40 = vsel %vm378_vm15, %v375_v37, %v377_v16  ;;  %773 = vmatmul.msk.f32.vlgmr.msra.gmra.mxu3 %vm464_vm2, %v330_v35  ;;  %v565_v45 = vsel %vm361_vm1, %v971_v14, %v562_v32 }
 0x2e0   :  { %v808_v41 = vpop.permute.xlu1 %807  ;;  %748 = vmatpush.msk.msra.mxu0 %vm1054_vm8, %v379_v39  ;;  %755 = vmatpush.msk.msra.mxu1 %vm1046_vm7, %v380_v40 }
 0x2e1   :  { %v810_v43 = vunpack.i.h.bf16 %v808_v41  ;;  %v809_v44 = vunpack.i.l.bf16 %v808_v41 }
 0x2e3   :  { %v444_v46 = vsel %vm443_vm0, %v809_v44, %v810_v43  ;;  %v625_v47 = vsel %vm443_vm0, %v809_v44, %v804_v58 }
 0x2e4   :  { %482 = vmatpush.msra.mxu0 %v444_v46  ;;  %651 = vmatpush.msra.mxu2 %v625_v47 }
 0x2e6   :  { %765 = vmatpush.msk.msra.mxu2 %vm1074_vm12, %v565_v45  ;;  %v358_v48 = vpop.permute.xlu0 %357  ;;  %v360_v38 = vpop.permute.xlu2 %359 }
 0x2e7   :  { %v362_v42 = vsel %vm361_vm1, %v971_v14, %v358_v48  ;;  %766 = vmatmul.msk.f32.vlgmr.msra.gmra.mxu2 %vm464_vm2, %v330_v35  ;;  %v363_v51 = vsel %vm361_vm1, %v358_v48, %v360_v38  ;;  %vm549_vm1 = vcmask 1041408  }
 0x2e8   :  { %v442_v49 = vpop.permute.xlu1 %441  ;;  %749 = vmatpush.msk.msra.mxu0 %vm1074_vm12, %v362_v42 }
 0x2e9   :  { %750 = vmatmul.msk.f32.vlgmr.msra.gmra.mxu0 %vm464_vm2, %v330_v35  ;;  %v445_v50 = vsel %vm443_vm0, %v810_v43, %v442_v49 }
 0x2ea   :  { %502 = vmatpush.msra.mxu1 %v445_v50 }
 0x2ec   :  { %756 = vmatpush.msk.msra.mxu1 %vm1070_vm11, %v363_v51 }
 0x2ed   :  { %757 = vmatmul.msk.f32.vlgmr.msra.gmra.mxu1 %vm464_vm2, %v330_v35 }
 0x2f0   :  { %v462_v14 = vpop.permute.xlu1 %461 }
 0x362   :  { %v674_v52 = vpop.f32.mrf.mxu3 }
 0x363   :  { %v675_v53 = vadd.f32 %v674_v52, %v462_v14 }
 0x365   :  { %v775_v54 = vmul.f32 -1.442695, %v675_v53 }
 0x366   :  { %v485_v55 = vpop.f32.mrf.mxu0 }
 0x367   :  { %815 = vpow2.f32 %v775_v54  ;;  %v486_v56 = vadd.f32 %v485_v55, %v462_v14 }
 0x369   :  { %v758_v59 = vmul.f32 -1.442695, %v486_v56 }
 0x36a   :  { %v505_v60 = vpop.f32.mrf.mxu1  ;;  %v654_v61 = vpop.f32.mrf.mxu2 }
 0x36b   :  { %817 = vpow2.f32 %v758_v59  ;;  %v506_v62 = vadd.f32 %v505_v60, %v462_v14  ;;  %v655_v63 = vadd.f32 %v654_v61, %v462_v14 }
 0x36d   :  { %v816_v0 = vpop.eup %815  ;;  %v759_v1 = vmul.f32 -1.442695, %v506_v62  ;;  %v774_v2 = vmul.f32 -1.442695, %v655_v63 }
 0x36e   :  { %v684_v57 = vadd.f32 1.0, %v816_v0 }
 0x36f   :  { %819 = vpow2.f32 %v759_v1 }
 0x370   :  { %821 = vrcp.f32 %v684_v57  ;;  %v709_v18 = vand.u32 2147483647, %v684_v57  ;;  %v711_v21 = vand.u32 2147483648, %v684_v57  ;;  %vm705_vm4 = vweird.f32 %v684_v57 }
 0x371   :  { %v818_v3 = vpop.eup %817  ;;  %823 = vpow2.f32 %v774_v2 }
 0x372   :  { %v514_v4 = vadd.f32 1.0, %v818_v3  ;;  %vm1167_vm5 = vcmp.eq.f32.partialorder %v709_v18, 8.507059e+37  ;;  %v712_v25 = vor.u32 1.1754944e-38, %v711_v21 }
 0x374   :  { %825 = vrcp.f32 %v514_v4  ;;  %vm521_vm9 = vweird.f32 %v514_v4  ;;  %v527_v34 = vand.u32 2147483648, %v514_v4  ;;  %v525_v16 = vand.u32 2147483647, %v514_v4 }
 0x375   :  { %v820_v5 = vpop.eup %819 }
 0x376   :  { %v822_v6 = vpop.eup %821  ;;  %v515_v7 = vadd.f32 1.0, %v820_v5  ;;  %v528_v45 = vor.u32 1.1754944e-38, %v527_v34  ;;  %vm526_vm0 = vcmp.eq.f32.partialorder %v525_v16, 8.507059e+37 }
 0x377   :  { %v824_v8 = vpop.eup %823  ;;  %v701_v9 = vmul.f32 %v822_v6, %v684_v57  ;;  %vm706_vm3 = vweird.f32 %v822_v6 }
 0x378   :  { %827 = vrcp.f32 %v515_v7  ;;  %v683_v11 = vadd.f32 1.0, %v824_v8  ;;  %v542_v31 = vand.u32 2147483648, %v515_v7  ;;  %vm1171_vm7 = vmor %vm705_vm4, %vm706_vm3  ;;  %v540_v33 = vand.u32 2147483647, %v515_v7 }
 0x379   :  { %v702_v10 = vsub.f32 1.0, %v701_v9  ;;  %vm536_vm11 = vweird.f32 %v515_v7 }
 0x37a   :  { %v826_v15 = vpop.eup %825  ;;  %829 = vrcp.f32 %v683_v11  ;;  %v696_v39 = vand.u32 2147483648, %v683_v11  ;;  %v543_v40 = vor.u32 1.1754944e-38, %v542_v31  ;;  %v694_v43 = vand.u32 2147483647, %v683_v11 }
 0x37b   :  { %v517_v12 = vmul.f32 %v826_v15, %v514_v4  ;;  %v703_v17 = vmul.f32 %v822_v6, %v702_v10  ;;  %vm522_vm6 = vweird.f32 %v826_v15  ;;  %vm541_vm14 = vcmp.eq.f32.partialorder %v540_v33, 8.507059e+37 }
 0x37c   :  { %vm1177_vm10 = vmor %vm521_vm9, %vm522_vm6  ;;  %vm690_vm15 = vweird.f32 %v683_v11  ;;  %v697_v49 = vor.u32 1.1754944e-38, %v696_v39  ;;  %vm695_vm3 = vcmp.eq.f32.partialorder %v694_v43, 8.507059e+37 }
 0x37d   :  { %v518_v19 = vsub.f32 1.0, %v517_v12  ;;  %v704_v26 = vadd.f32 %v822_v6, %v703_v17 }
 0x37e   :  { %v828_v20 = vpop.eup %827 }
 0x37f   :  { %v519_v22 = vmul.f32 %v826_v15, %v518_v19  ;;  %v532_v23 = vmul.f32 %v828_v20, %v515_v7  ;;  %vm537_vm8 = vweird.f32 %v828_v20  ;;  %v708_v58 = vsel %vm1171_vm7, %v822_v6, %v704_v26 }
 0x380   :  { %v830_v27 = vpop.eup %829  ;;  %vm538_vm12 = vmor %vm536_vm11, %vm537_vm8  ;;  %v713_v44 = vsel %vm1167_vm5, %v712_v25, %v708_v58 }
 0x381   :  { %v533_v30 = vsub.f32 1.0, %v532_v23  ;;  %v686_v13 = vmul.f32 %v830_v27, %v683_v11  ;;  %v520_v32 = vadd.f32 %v826_v15, %v519_v22  ;;  %vm691_vm13 = vweird.f32 %v830_v27 }
 0x382   :  { %vm692_vm2 = vmor %vm690_vm15, %vm691_vm13  ;;  %v717_v50 = vrot.slane %v713_v44, 6 }
 0x383   :  { %v534_v24 = vmul.f32 %v828_v20, %v533_v30  ;;  %v687_v35 = vsub.f32 1.0, %v686_v13  ;;  %v524_v46 = vsel %vm1177_vm10, %v826_v15, %v520_v32 }
 0x384   :  { %v529_v51 = vsel %vm526_vm0, %v528_v45, %v524_v46 }
 0x385   :  { %v535_v37 = vadd.f32 %v828_v20, %v534_v24  ;;  %v688_v41 = vmul.f32 %v830_v27, %v687_v35 }
 0x387   :  { %v539_v47 = vsel %vm538_vm12, %v828_v20, %v535_v37  ;;  %v689_v42 = vadd.f32 %v830_v27, %v688_v41 }
 0x388   :  { %v544_v48 = vsel %vm541_vm14, %v543_v40, %v539_v47 }
 0x389   :  { %v548_v38 = vrot.slane %v544_v48, 6  ;;  %v693_v14 = vsel %vm692_vm2, %v830_v27, %v689_v42 }
 0x38a   :  { %v698_v53 = vsel %vm695_vm3, %v697_v49, %v693_v14 }
 0x38b   :  { %v550_v52 = vsel %vm549_vm1, %v529_v51, %v548_v38  ;;  %v718_v54 = vsel %vm549_vm1, %v698_v53, %v717_v50 }
 0x38c   :  { %552 = vst [vmem:[%s1200_s9] sm:$0xf] %v550_v52 }
 0x38d   :  { %776 = vst [vmem:[%s1200_s9 + $0x4] sm:$0xf] %v718_v54 }

</bundles_post_ra>
